<compile_context>
chip_gen: v7x
topology: tpu7x:2x2x1
jax: 0.10.0
libtpu: 0.0.40
codegen_flags: <defaults>
</compile_context>

<pallas_src>
import functools

import jax
import jax.numpy as jnp
from jax.experimental import pallas as pl
from jax.experimental.pallas import tpu as pltpu

# Module-level constants from the PyTorch file.  NOTE: ActFun.forward uses the
# GLOBAL `thresh` (0.5), not LIFNode.self.thresh, so the forward spikes at 0.5.
THRESH = 0.5
DECAY = 0.25   # LIFNode default init_decay


# --------------------------------------------------------------------------
# Kernels
# --------------------------------------------------------------------------
def _lif_kernel_hard(x_ref, o_ref, mem_ref, *, thresh, decay):
    """Hard-threshold (act=False) LIF step for one (spatial_tile, t) grid point.

    x_ref / o_ref : (1, tile_r, D) block at time t.
    mem_ref       : (tile_r, D) f32 scratch carrying the membrane potential
                    across the sequential (innermost) T grid axis.
    """
    t = pl.program_id(1)
    x = x_ref[0].astype(jnp.float32)

    prev_mem = mem_ref[...]                    # stale at t==0: discarded below
    # mem*decay*(1 - spike) with spike = (mem > thresh)  ->  fused select.
    leak = jnp.where(prev_mem > thresh, 0.0, prev_mem * decay)
    new_mem = jnp.where(t == 0, x, leak + x)

    mem_ref[...] = new_mem
    o_ref[0] = (new_mem > thresh).astype(o_ref.dtype)


def _lif_kernel_silu(x_ref, o_ref, mem_ref, spk_ref, *, decay):
    """SiLU (act=True) LIF step; caches the previous spike to avoid a second
    sigmoid per element per step (EUP slot is single-issue)."""
    t = pl.program_id(1)
    x = x_ref[0].astype(jnp.float32)

    prev_mem = mem_ref[...]                    # stale at t==0: discarded below
    prev_spk = spk_ref[...]
    new_mem = jnp.where(t == 0, x, prev_mem * decay * (1.0 - prev_spk) + x)
    spike = new_mem * jax.nn.sigmoid(new_mem)

    mem_ref[...] = new_mem
    spk_ref[...] = spike
    o_ref[0] = spike.astype(o_ref.dtype)


# --------------------------------------------------------------------------
# Tiling / VMEM sizing helpers
# --------------------------------------------------------------------------
def _round_up(v, m):
    return ((v + m - 1) // m) * m


def _vmem_params():
    """(vmem_limit_bytes, block_budget_bytes) sized to this TPU generation."""
    phys = None
    try:
        info = pltpu.get_tpu_info()
        phys = int(getattr(info, "vmem_capacity_bytes", 0)) or None
    except Exception:
        phys = None
    if phys is None:
        phys = 64 << 20          # conservative default (v7x has 64 MiB)
    vmem_limit = min((phys * 3) // 4, 100 << 20)
    block_budget = max(8 << 20, vmem_limit - (4 << 20))  # headroom for Mosaic scratch
    return int(vmem_limit), int(block_budget)


def _pick_tile_rows(R, D, itemsize, n_scratch, block_budget_bytes):
    """Largest multiple-of-8 row tile s.t. the whole VMEM working set
    (2x in + 2x out double-buffered + f32 scratch(es)) fits the budget,
    while keeping >= 2 spatial tiles (megacore / v7x 2-TC sharding)."""
    per_row = D * (4 * itemsize + 4 * n_scratch)
    rows_budget = max(8, (block_budget_bytes // per_row) // 8 * 8)
    # Keep a single input block <= ~12 MiB (pipeline granularity / compile sanity).
    rows_block_cap = max(8, ((12 << 20) // max(1, D * itemsize)) // 8 * 8)
    # Keep >= 2 spatial tiles when possible (v7x has 2 TensorCores).
    rows_parallel_cap = _round_up(-(-R // 2), 8)
    rows_full = _round_up(R, 8)
    return max(8, min(rows_budget, rows_block_cap, rows_parallel_cap, rows_full))


# --------------------------------------------------------------------------
# Wrapper
# --------------------------------------------------------------------------
@functools.partial(jax.jit, static_argnames=("thresh", "decay", "act"))
def lif_forward(x, thresh=THRESH, decay=DECAY, act=False):
    """LIFNode.forward: x (T, B, L, D) -> spikes (T, B, L, D)."""
    T, B, L, D = x.shape
    N = B * L * D
    itemsize = jnp.dtype(x.dtype).itemsize

    # The recurrence is purely elementwise over (B, L, D), so any contiguous
    # repartition of those axes is valid.  Prefer a lane-dense (last dim = 128)
    # layout so output stores are unmasked full-lane vst's.
    if D % 128 == 0:
        R_eff, D_eff = B * L, D
    elif N % 128 == 0:
        R_eff, D_eff = N // 128, 128
    else:
        R_eff, D_eff = B * L, D          # fallback: masked lane stores, still correct
    xr = x.reshape(T, R_eff, D_eff)      # contiguous reshape: no HBM transpose

    n_scratch = 2 if act else 1
    vmem_limit, block_budget = _vmem_params()
    tile_r = _pick_tile_rows(R_eff, D_eff, itemsize, n_scratch, block_budget)

    # No host-side padding: cdiv grid + Pallas-masked ragged last block.
    grid = (pl.cdiv(R_eff, tile_r), T)   # (spatial [parallel], time [sequential])

    if act:
        kernel = functools.partial(_lif_kernel_silu, decay=float(decay))
    else:
        kernel = functools.partial(
            _lif_kernel_hard, thresh=float(thresh), decay=float(decay))

    out = pl.pallas_call(
        kernel,
        out_shape=jax.ShapeDtypeStruct((T, R_eff, D_eff), x.dtype),
        grid_spec=pltpu.PrefetchScalarGridSpec(
            num_scalar_prefetch=0,
            grid=grid,
            in_specs=[pl.BlockSpec((1, tile_r, D_eff), lambda r, t: (t, r, 0))],
            out_specs=pl.BlockSpec((1, tile_r, D_eff), lambda r, t: (t, r, 0)),
            scratch_shapes=[pltpu.VMEM((tile_r, D_eff), jnp.float32)] * n_scratch,
        ),
        compiler_params=pltpu.CompilerParams(
            dimension_semantics=("parallel", "arbitrary"),
            vmem_limit_bytes=vmem_limit,
        ),
        cost_estimate=pl.CostEstimate(
            flops=6 * T * R_eff * D_eff,
            transcendentals=(T * R_eff * D_eff) if act else 0,
            bytes_accessed=2 * T * R_eff * D_eff * itemsize,
        ),
    )(xr)

    return out.reshape(T, B, L, D)


# --------------------------------------------------------------------------
# Pure-JAX reference (mirrors LIFNode.forward)
# --------------------------------------------------------------------------
def lif_reference(x, thresh=THRESH, decay=DECAY, act=False):
    x32 = x.astype(jnp.float32)
    spike_of = ((lambda m: m * jax.nn.sigmoid(m)) if act
                else (lambda m: (m > thresh).astype(jnp.float32)))
    mem = x32[0]
    spike = spike_of(mem)

    def step(carry, xt):
        mem, spike = carry
        mem = mem * decay * (1.0 - spike) + xt
        spike = spike_of(mem)
        return (mem, spike), spike

    (_, _), rest = jax.lax.scan(step, (mem, spike), x32[1:])
    out = jnp.concatenate([spike[None], rest], axis=0)
    return out.astype(x.dtype)


if __name__ == "__main__":
    key0, key1 = jax.random.split(jax.random.PRNGKey(0))

    # Case 1: lane-aligned shape (D multiple of 128), x is (T, B, L, D).
    T, B, L, D = 8, 2, 4, 128
    x1 = jax.random.normal(key0, (T, B, L, D), dtype=jnp.float32)
    out1 = jax.block_until_ready(lif_forward(x1))
    assert out1.shape == (T, B, L, D)
    assert jnp.max(jnp.abs(out1 - lif_reference(x1))) < 1e-3, "hard-threshold mismatch"

    # Case 2: ragged shape (exercises the no-pad masked last block path).
    T2, B2, L2, D2 = 6, 2, 3, 48
    x2 = jax.random.normal(key1, (T2, B2, L2, D2), dtype=jnp.float32)
    out2 = jax.block_until_ready(lif_forward(x2))
    assert jnp.max(jnp.abs(out2 - lif_reference(x2))) < 1e-3, "ragged-shape mismatch"

    # Case 3: SiLU activation path (act=True).
    out3 = jax.block_until_ready(lif_forward(x2, act=True))
    assert jnp.max(jnp.abs(out3 - lif_reference(x2, act=True))) < 1e-3, "SiLU mismatch"

    # TODO(synk): store_fire_rate / fire_rate bookkeeping is host-side Python
    # state (a list of .item() scalars) and has no in-kernel equivalent.
    print("KERNEL_OK")
</pallas_src>

<mosaic_0001>
module attributes {stable_mosaic.version = 11 : i64} {
  func.func @_lif_kernel_hard(%arg0: i32, %arg1: i32, %arg2: memref<1x8x128xf32, #tpu.memory_space<vmem>>, %arg3: memref<1x8x128xf32, #tpu.memory_space<vmem>>, %arg4: memref<8x128xf32, #tpu.memory_space<vmem>>) attributes {dimension_semantics = [#tpu.dimension_semantics<parallel>, #tpu.dimension_semantics<arbitrary>], iteration_bounds = array<i64: 1, 8>, scalar_prefetch = 0 : i64, scratch_operands = 1 : i64, tpu.core_type = #tpu.core_type<tc>, window_params = [{transform_indices = @transform_0, window_bounds = array<i64: 1, 8, 128>}, {transform_indices = @transform_1, window_bounds = array<i64: 1, 8, 128>}]} {
    %c0 = arith.constant 0 : index
    %c0_0 = arith.constant 0 : index
    %c0_1 = arith.constant 0 : index
    %0 = vector.load %arg2[%c0, %c0_0, %c0_1] : memref<1x8x128xf32, #tpu.memory_space<vmem>>, vector<1x8x128xf32>
    %1 = vector.shape_cast %0 : vector<1x8x128xf32> to vector<8x128xf32>
    %c0_2 = arith.constant 0 : index
    %c0_3 = arith.constant 0 : index
    %2 = vector.load %arg4[%c0_2, %c0_3] : memref<8x128xf32, #tpu.memory_space<vmem>>, vector<8x128xf32>
    %cst = arith.constant 5.000000e-01 : f32
    %3 = vector.broadcast %cst : f32 to vector<8x128xf32>
    %4 = arith.cmpf ogt, %2, %3 : vector<8x128xf32>
    %cst_4 = arith.constant 2.500000e-01 : f32
    %5 = vector.broadcast %cst_4 : f32 to vector<8x128xf32>
    %6 = arith.mulf %2, %5 : vector<8x128xf32>
    %cst_5 = arith.constant 0.000000e+00 : f32
    %7 = vector.broadcast %cst_5 : f32 to vector<8x128xf32>
    %8 = arith.select %4, %7, %6 : vector<8x128xi1>, vector<8x128xf32>
    %c0_i32 = arith.constant 0 : i32
    %9 = arith.cmpi eq, %arg1, %c0_i32 : i32
    %10 = arith.addf %8, %1 : vector<8x128xf32>
    %11 = arith.select %9, %1, %10 : vector<8x128xf32>
    %c0_6 = arith.constant 0 : index
    %c0_7 = arith.constant 0 : index
    %12 = vector.load %arg4[%c0_6, %c0_7] : memref<8x128xf32, #tpu.memory_space<vmem>>, vector<8x128xf32>
    tpu.vector_store %arg4[%c0_6, %c0_7], %11 {strides = array<i32>} : memref<8x128xf32, #tpu.memory_space<vmem>>, vector<8x128xf32>,
    %cst_8 = arith.constant 5.000000e-01 : f32
    %13 = vector.broadcast %cst_8 : f32 to vector<8x128xf32>
    %14 = arith.cmpf ogt, %11, %13 : vector<8x128xf32>
    %15 = arith.extui %14 : vector<8x128xi1> to vector<8x128xi32>
    %16 = arith.sitofp %15 : vector<8x128xi32> to vector<8x128xf32>
    %c0_9 = arith.constant 0 : index
    %c0_10 = arith.constant 0 : index
    %c0_11 = arith.constant 0 : index
    %17 = vector.load %arg3[%c0_9, %c0_10, %c0_11] : memref<1x8x128xf32, #tpu.memory_space<vmem>>, vector<1x8x128xf32>
    %18 = vector.shape_cast %17 : vector<1x8x128xf32> to vector<8x128xf32>
    %19 = vector.shape_cast %16 : vector<8x128xf32> to vector<1x8x128xf32>
    tpu.vector_store %arg3[%c0_9, %c0_10, %c0_11], %19 {strides = array<i32>} : memref<1x8x128xf32, #tpu.memory_space<vmem>>, vector<1x8x128xf32>,
    return
  }
  func.func @transform_0(%arg0: i32, %arg1: i32) -> (i32, i32, i32) {
    %c0_i32 = arith.constant 0 : i32
    %c0_i32_0 = arith.constant 0 : i32
    return %arg1, %arg0, %c0_i32 : i32, i32, i32
  }
  func.func @transform_1(%arg0: i32, %arg1: i32) -> (i32, i32, i32) {
    %c0_i32 = arith.constant 0 : i32
    %c0_i32_0 = arith.constant 0 : i32
    return %arg1, %arg0, %c0_i32 : i32, i32, i32
  }
}

</mosaic_0001>

<bundles_post_ra>
// kernel: lif_forward.1
= control target key start
LH: loop header
LB: loop body
LE: loop exit
PB: predicated region body
PF: predicated region fallthrough
CT: control target
= control target key end

     0   :  { %6 = vsyncpa [#allocation4], 0  ;;  %s635_s0 = inlined_call_operand.hbm [shape: f32[8,8,128], index: 0, kind: input, shape index: {}]   ;;  %s636_s1 = inlined_call_operand.hbm [shape: f32[8,8,128], index: 1, kind: output, shape index: {}]  }
   0x1   :  { %8 = vsyncpa [#allocation4 + $0x1], 0 }
   0x2   :  { %9 = vsyncpa [#allocation5], 0 }
   0x3   :  { %11 = vsyncpa [#allocation5 + $0x1], 0  ;;  %s464_s6 = smov 0   ;;  %s466_s7 = smov 0  }
   0x4   :  { %s468_s8 = smov 0   ;;  %s470_s9 = smov 0  }
   0x5   :  { %s472_s10 = smov 0   ;;  %s474_s11 = smov 0  }
   0x6 LB: > { %s260_s12 = sadd.s32 4294967295, %s449_s11   ;;  %s261_s13 = sadd.s32 4294967294, %s449_s11   ;;  %s449_s11 = sphi %s474_s11, %s17_s11   ;;  %s445_s10 = sphi %s472_s10, %s651_s10   ;;  %s441_s9 = sphi %s470_s9, %s650_s9   ;;  %s437_s8 = sphi %s468_s8, %s649_s8   ;;  %s433_s7 = sphi %s466_s7, %s648_s7   ;;  %s429_s6 = sphi %s464_s6, %s647_s6  }
   0x7   : > { %s26_s14 = sadd.s32 1, %s445_s10  ;;  %s38_s15 = sadd.s32 1, %s437_s8 }
   0x8   : > { %p27_p0 = scmp.ge.s32.totalorder %s26_s14, 8  ;;  %p45_p1 = scmp.ne.s32.totalorder %s437_s8, %s433_s7 }
   0x9   : > { %p46_p2 = scmp.eq.s32.totalorder %s449_s11, 0  ;;  %p51_p3 = scmp.ne.s32.totalorder %s433_s7, %s429_s6 }
   0xa   : > { %s653_s14 = smov (%p27_p0, %s26_s14), 0  ;;  %p52_p5 = scmp.eq.s32.totalorder %s260_s12, 0 }
   0xb   : > { %p505_p4 = por %p46_p2, %p45_p1  ;;  %s33_s17 = ssub.s32 %s445_s10, %s653_s14 }
   0xc   : > { %p77_p6 = scmp.eq.s32.totalorder %s260_s12, 7  ;;  %p36_p7 = scmp.eq.s32.totalorder %s33_s17, 0 }
   0xd   : > { %p511_p8 = por %p52_p5, %p51_p3  ;;  %p83_p10 = scmp.eq.s32.totalorder %s261_s13, 7 }
   0xe   : > { %p515_p9 = por %p77_p6, %p45_p1  ;;  %p286_p12 = scmp.lt.s32.totalorder %s449_s11, 8 }
   0xf   : > { %s520_s20 = scalar_select %p36_p7, %s437_s8, %s38_s15  }
  0x10   : > { %s640_s19 = scalar_select %p515_p9, 1, 0 }
  0x11   : > { %p522_p11 = por %p83_p10, %p51_p3  ;;  %s103_s22 = sand.u32 1, %s437_s8  }
  0x12   : > { %s264_s23 = sshll.u32 %s103_s22, 3  ;;  %s265_s24 = sshll.u32 %s445_s10, 7 }
  0x13   : > { %s641_s21 = scalar_select %p522_p11, 1, 0 }
  0x14   : > { %s532_s27 = scalar_lea.hbm %s635_s0, %s265_s24  ;;  %s107_s28 = scalar_lea.vmem [#allocation3], %s264_s23 }
  0x15   : > { %s115_s29 = sshll.u32 %s107_s28, 4  ;;  %p538_p13 = pnand %p286_p12, %p505_p4  ;;  %s534_s29 = int_to_ptr.vmem [resolvable:$true] %s115_s29 }
  0x16   : > { %s104_s2 = scalar_lea.sflag [#allocation4], %s103_s22  ;;  %s337_s3 = scalar_lea.hbm %s532_s27, 128 }
  0x17   : > { %p338_p2 = scmp.ne.s32.totalorder %s532_s27, %s337_s3  ;;  %p339_p3 = pneg %p538_p13 }
  0x18   : > { %s342_s12 = scalar_lea.hbm %s635_s0, 1024  ;;  %p343_p4 = scmp.lt.u32.totalorder %s532_s27, %s635_s0 }
  0x19   : > { %p340_p5 = pnand %p339_p3, %p338_p2  ;;  %p344_p7 = scmp.lt.u32.totalorder %s342_s12, %s337_s3 }
  0x1a   : > { %p346_p12 = scmp.lt.u32.totalorder %s337_s3, %s532_s27 }
  0x1b   : > { %p341_p6 = pneg %p340_p5  ;;  %p345_p10 = por %p344_p7, %p343_p4 }
  0x1d   : > { %p347_p0 = por %p346_p12, %p345_p10 }
  0x1f   : > { %p348_p1 = pnand %p347_p0, %p341_p6 }
  0x21   : > { %351 = shalt.err (!%p348_p1)
}
  0x22   : > { %s352_s16 = scalar_lea.vmem %s534_s29, 128  ;;  %s451_s17 = smov [#allocation3]  }
  0x23   : > { %p353_p2 = scmp.ne.s32.totalorder %s534_s29, %s352_s16  ;;  %s357_s22 = sshll.u32 %s451_s17, 4  ;;  %s358_s22 = int_to_ptr.vmem [resolvable:$false] %s357_s22 }
  0x24   : > { %s359_s23 = scalar_lea.vmem %s358_s22, 256  ;;  %p360_p9 = scmp.lt.s32.totalorder %s534_s29, %s358_s22 }
  0x25   : > { %p355_p5 = pnand %p353_p2, %p339_p3  ;;  %p361_p4 = scmp.lt.s32.totalorder %s359_s23, %s352_s16 }
  0x27   : > { %p356_p11 = pneg %p355_p5  ;;  %p362_p7 = por %p361_p4, %p360_p9 }
  0x29   : > { %p363_p10 = pnand %p362_p7, %p356_p11 }
  0x2b   : > { %366 = shalt.err (!%p363_p10)
}
  0x2c   : > { %281 = dma.hbm_to_vmem [thread:$0]  (!%p538_p13), %s532_s27, 128, %s534_s29, %s104_s2  }
  0x2d   : > { %p643_p0 = scmp.lt.s32.totalorder %s449_s11, 9  ;;  %p644_p1 = scmp.ge.s32.totalorder %s449_s11, 1 }
  0x2f   : > { %p121_p3 = pnand %p644_p1, %p643_p0 }
  0x30   : > { %s574_s24 = sand.u32 (!%p121_p3), 1, %s433_s7  }
  0x31   : > { %124 = sbr.rel (%p121_p3) target bundleno = 84 (0x54), region = 24  ;;  %s267_s25 = sshll.u32 (!%p121_p3), %s574_s24, 3 }
  0x32   : > { %s127_s26 = scalar_lea.sflag (!%p121_p3), [#allocation4], %s574_s24  ;;  %s130_s28 = scalar_lea.vmem (!%p121_p3), [#allocation3], %s267_s25 }
  0x38   : > { %420 = dma.done.wait (%p511_p8), %s127_s26, 128  }
  0x39   : > { %422 = vsyncadd (%p511_p8), %s127_s26, 4294967168  ;;  %p154_p9 = scmp.eq.s32.totalorder %s441_s9, 0  ;;  %v150_v0 = vld [vmem:[#allocation2] sm:$0xff]  ;;  %v149_v2 = vld [vmem:[%s130_s28] sm:$0xff]  ;;  %s148_s29 = scalar_lea.vmem [#allocation6], %s267_s25  ;;  %v452_v7 = vmov 0.0  }
  0x3a   : > { %vm151_vm0 = vcmp.gt.f32.partialorder %v150_v0, 0.5  ;;  %v152_v3 = vmul.f32 0.25, %v150_v0  ;;  %s180_s30 = sshll.u32 %s148_s29, 4  ;;  %s271_s2 = sshll.u32 %s441_s9, 7  ;;  %s584_s30 = int_to_ptr.vmem [resolvable:$true] %s180_s30 }
  0x3b   : > { %s156_s27 = scalar_select %p154_p9, 1, 0 }
  0x3c   : > { %v153_v4 = vsel %vm151_vm0, 0.0, %v152_v3  ;;  %s589_s4 = scalar_lea.hbm %s636_s1, %s271_s2  ;;  %s166_s5 = scalar_lea.sflag [#allocation5], %s574_s24 }
  0x3d   : > { %v157_v1 = vstv %s156_s27  ;;  %v155_v5 = vadd.f32 %v153_v4, %v149_v2  ;;  %s367_s12 = scalar_lea.vmem %s584_s30, 128  ;;  %p645_p11 = scmp.ne.s32.totalorder %s640_s19, 0 }
  0x3e   : > { %vm158_vm1 = vcmp.eq.s32.totalorder %v157_v1, 1  ;;  %p368_p8 = scmp.ne.s32.totalorder %s584_s30, %s367_s12  ;;  %s453_s9 = smov [#allocation6]  }
  0x3f   : > { %v159_v6 = vsel %vm158_vm1, %v149_v2, %v155_v5  ;;  %s371_s13 = sshll.u32 %s453_s9, 4  ;;  %s372_s13 = int_to_ptr.vmem [resolvable:$false] %s371_s13 }
  0x40   : > { %vm161_vm2 = vcmp.gt.f32.partialorder %v159_v6, 0.5  ;;  %160 = vst [vmem:[#allocation2] sm:$0xff] %v159_v6  ;;  %p369_p13 = pnand %p368_p8, %p645_p11  ;;  %s373_s15 = scalar_lea.vmem %s372_s13, 256 }
  0x41   : > { %v269_v8 = vsel %vm161_vm2, 1.0, %v452_v7  ;;  %p374_p12 = scmp.lt.s32.totalorder %s584_s30, %s372_s13  ;;  %p375_p2 = scmp.lt.s32.totalorder %s373_s15, %s367_s12 }
  0x42   : > { %164 = vst [vmem:[%s148_s29] sm:$0xff] %v269_v8  ;;  %p370_p6 = pneg %p369_p13 }
  0x43   : > { %p376_p5 = por %p375_p2, %p374_p12 }
  0x45   : > { %p377_p4 = pnand %p376_p5, %p370_p6 }
  0x47   : > { %380 = shalt.err (!%p377_p4)
}
  0x48   : > { %s381_s16 = scalar_lea.hbm %s589_s4, 128  ;;  %s385_s23 = scalar_lea.hbm %s636_s1, 1024 }
  0x49   : > { %p382_p7 = scmp.ne.s32.totalorder %s589_s4, %s381_s16  ;;  %p386_p1 = scmp.lt.u32.totalorder %s589_s4, %s636_s1 }
  0x4a   : > { %p387_p3 = scmp.lt.u32.totalorder %s385_s23, %s381_s16  ;;  %p389_p8 = scmp.lt.u32.totalorder %s381_s16, %s589_s4 }
  0x4b   : > { %p383_p10 = pnand %p382_p7, %p645_p11 }
  0x4c   : > { %p388_p9 = por %p387_p3, %p386_p1 }
  0x4d   : > { %p384_p0 = pneg %p383_p10 }
  0x4e   : > { %p390_p13 = por %p389_p8, %p388_p9 }
  0x50   : > { %p391_p6 = pnand %p390_p13, %p384_p0 }
  0x52   : > { %394 = shalt.err (!%p391_p6)
}
  0x53   : > { %276 = dma.vmem_to_hbm [thread:$0]  (%p645_p11), %s584_s30, 128, %s589_s4, %s166_s5  }
  0x54 PF: > { %p287_p12 = scmp.ge.s32.totalorder %s449_s11, 2  ;;  %s192_s26 = sand.u32 1, %s429_s6  }
  0x55   : > { %p646_p2 = scmp.ne.s32.totalorder %s641_s21, 0  ;;  %s193_s28 = scalar_lea.sflag [#allocation5], %s192_s26 }
  0x57   : > { %p283_p5 = pnand %p287_p12, %p646_p2 }
  0x59   : > { %424 = dma.done.wait (!%p283_p5), %s193_s28, 128  }
  0x5a   : > { %426 = vsyncadd (!%p283_p5), %s193_s28, 4294967168  ;;  %s17_s11 = sadd.s32 1, %s449_s11   ;;  %s647_s6 = smov %s433_s7 }
  0x5b   : > { %p14_p4 = scmp.ge.s32.totalorder %s17_s11, 10   ;;  %s648_s7 = smov %s437_s8 }
  0x5c   : > { %s649_s8 = smov %s520_s20  ;;  %s650_s9 = smov %s445_s10 }
  0x5d   : > { %s651_s10 = smov %s653_s14  ;;  %16 = sbr.rel (!%p14_p4) target bundleno = 6 (0x6), region = 69 }
  0x64   :  { %198 = vsyncpa [#allocation4], 1 }
  0x65   :  { %200 = vsyncpa [#allocation4 + $0x1], 1 }
  0x66   :  { %201 = vsyncpa [#allocation5], 1 }
  0x67   :  { %203 = vsyncpa [#allocation5 + $0x1], 1 }

</bundles_post_ra>
